<compile_context>
chip_gen: v6e
topology: v6e:2x2x1
jax: 0.10.0
libtpu: 0.0.40
codegen_flags: <defaults>
</compile_context>

<pallas_src>
import functools
import math

import jax
import jax.numpy as jnp
from jax.experimental import pallas as pl
from jax.experimental.pallas import tpu as pltpu


# ---------------------------------------------------------------------------
# Kernel 1: dual linear projection (two matmuls sharing the M tiling)
#   y1 = x1 @ W1 + b1 ,  y2 = x2 @ W2 + b2      (x/W in bf16, f32 accumulate)
# ---------------------------------------------------------------------------
def _dual_linear_kernel(x1_ref, w1_ref, b1_ref, x2_ref, w2_ref, b2_ref,
                        y1_ref, y2_ref):
    y1 = jnp.dot(x1_ref[...], w1_ref[...],
                 preferred_element_type=jnp.float32) + b1_ref[...]
    y2 = jnp.dot(x2_ref[...], w2_ref[...],
                 preferred_element_type=jnp.float32) + b2_ref[...]
    y1_ref[...] = y1.astype(y1_ref.dtype)
    y2_ref[...] = y2.astype(y2_ref.dtype)


def dual_linear(x1, w1, b1, x2, w2, b2, out_dtype, block_m=512):
    """x1,x2: [M, Din]; w1: [Din, N1]; w2: [Din, N2]. Returns (y1, y2)."""
    M, Din = x1.shape
    N1 = w1.shape[1]
    N2 = w2.shape[1]
    bm = M if M <= block_m else block_m
    assert bm == M or bm % 8 == 0, "block_m must be a multiple of 8"
    grid = (pl.cdiv(M, bm),)

    return pl.pallas_call(
        _dual_linear_kernel,
        out_shape=(jax.ShapeDtypeStruct((M, N1), out_dtype),
                   jax.ShapeDtypeStruct((M, N2), out_dtype)),
        grid=grid,
        in_specs=[
            pl.BlockSpec((bm, Din), lambda m: (m, 0)),
            pl.BlockSpec((Din, N1), lambda m: (0, 0)),   # resident weight
            pl.BlockSpec((1, N1), lambda m: (0, 0)),
            pl.BlockSpec((bm, Din), lambda m: (m, 0)),
            pl.BlockSpec((Din, N2), lambda m: (0, 0)),   # resident weight
            pl.BlockSpec((1, N2), lambda m: (0, 0)),
        ],
        out_specs=(pl.BlockSpec((bm, N1), lambda m: (m, 0)),
                   pl.BlockSpec((bm, N2), lambda m: (m, 0))),
        compiler_params=pltpu.CompilerParams(dimension_semantics=("parallel",)),
    )(x1, w1, b1.reshape(1, N1), x2, w2, b2.reshape(1, N2))


# ---------------------------------------------------------------------------
# Kernel 2: attention core, one (batch, head) tile per grid step
#   S = (Q/sqrt(dk)) K^T ; softmax over keys -> attention, attn @ V
#                          softmax over queries -> attention_2, attn_2 @ V_2
# ---------------------------------------------------------------------------
def _attn_head_kernel(q_ref, k_ref, v_ref, v2_ref,
                      attn_ref, attn2_ref, o1_ref, o2_ref):
    f32 = jnp.float32
    q = q_ref[0, 0]    # [Lq, dk] bf16, already scaled by 1/sqrt(dk)
    k = k_ref[0, 0]    # [Lk, dk]
    v = v_ref[0, 0]    # [Lk, dv]
    v2 = v2_ref[0, 0]  # [Lq, dv]

    # S = Q K^T — NT matmul, transpose absorbed by the MXU.
    s = jax.lax.dot_general(q, k, (((1,), (1,)), ((), ())),
                            preferred_element_type=f32)           # [Lq, Lk]

    # softmax over keys (last dim) -> attention
    m1 = jnp.max(s, axis=-1, keepdims=True)
    e1 = jnp.exp(s - m1)
    p1 = e1 * pl.reciprocal(jnp.sum(e1, axis=-1, keepdims=True), approx=True)

    # softmax over queries (== softmax(S^T) along its last dim) -> attention_2^T
    m2 = jnp.max(s, axis=0, keepdims=True)
    e2 = jnp.exp(s - m2)
    p2t = e2 * pl.reciprocal(jnp.sum(e2, axis=0, keepdims=True), approx=True)

    attn_ref[0, 0] = p1.astype(attn_ref.dtype)
    attn2_ref[0, 0] = p2t.T.astype(attn2_ref.dtype)   # transpose only for writeback

    # attn @ V ; attn_2 @ V_2 with the MXU absorbing the attn_2 transpose
    o1 = jnp.dot(p1.astype(v.dtype), v, preferred_element_type=f32)       # [Lq, dv]
    o2 = jax.lax.dot_general(p2t.astype(v2.dtype), v2,
                             (((0,), (0,)), ((), ())),
                             preferred_element_type=f32)                  # [Lk, dv]
    o1_ref[0, 0] = o1.astype(o1_ref.dtype)
    o2_ref[0, 0] = o2.astype(o2_ref.dtype)


def attention_heads(Qh, Kh, Vh, V2h, *, attn_dtype, head_out_dtype):
    """Inputs in head-major layout [B, H, L, d]. Returns attn, attn_2, O1h, O2h."""
    B, H, Lq, d_k = Qh.shape
    Lk = Kh.shape[2]
    d_v = Vh.shape[3]

    def blk(L, d):
        return pl.BlockSpec((1, 1, L, d), lambda b, h: (b, h, 0, 0))

    return pl.pallas_call(
        _attn_head_kernel,
        out_shape=(
            jax.ShapeDtypeStruct((B, H, Lq, Lk), attn_dtype),       # attention
            jax.ShapeDtypeStruct((B, H, Lk, Lq), attn_dtype),       # attention_2
            jax.ShapeDtypeStruct((B, H, Lq, d_v), head_out_dtype),  # per-head attn@V
            jax.ShapeDtypeStruct((B, H, Lk, d_v), head_out_dtype),  # per-head attn_2@V_2
        ),
        grid=(B, H),
        in_specs=[blk(Lq, d_k), blk(Lk, d_k), blk(Lk, d_v), blk(Lq, d_v)],
        out_specs=(blk(Lq, Lk), blk(Lk, Lq), blk(Lq, d_v), blk(Lk, d_v)),
        compiler_params=pltpu.CompilerParams(
            dimension_semantics=("parallel", "parallel"),
            vmem_limit_bytes=48 * 1024 * 1024),
    )(Qh, Kh, Vh, V2h)


# ---------------------------------------------------------------------------
# Kernel 3: wide-K output projection + bias + residual + LayerNorm, M-tiled
#   out = LN(x @ W_O + b_O + residual)
# ---------------------------------------------------------------------------
def _proj_residual_ln_kernel(x_ref, w_ref, b_ref, res_ref, g_ref, beta_ref,
                             out_ref, *, eps):
    f32 = jnp.float32
    y = jnp.dot(x_ref[...], w_ref[...], preferred_element_type=f32)
    y = y + b_ref[...].astype(f32) + res_ref[...].astype(f32)
    mu = jnp.mean(y, axis=-1, keepdims=True)
    var = jnp.mean((y - mu) * (y - mu), axis=-1, keepdims=True)
    out = (y - mu) * jax.lax.rsqrt(var + eps) * g_ref[...].astype(f32) \
        + beta_ref[...].astype(f32)
    out_ref[...] = out.astype(out_ref.dtype)


def proj_residual_ln(x, w, b, res, gamma, beta, *, eps, out_dtype, block_m=512):
    M, K = x.shape
    Dm = w.shape[1]
    bm = M if M <= block_m else block_m
    assert bm == M or bm % 8 == 0, "block_m must be a multiple of 8"
    grid = (pl.cdiv(M, bm),)

    kern = functools.partial(_proj_residual_ln_kernel, eps=eps)
    return pl.pallas_call(
        kern,
        out_shape=jax.ShapeDtypeStruct((M, Dm), out_dtype),
        grid=grid,
        in_specs=[
            pl.BlockSpec((bm, K), lambda m: (m, 0)),
            pl.BlockSpec((K, Dm), lambda m: (0, 0)),   # resident weight
            pl.BlockSpec((1, Dm), lambda m: (0, 0)),
            pl.BlockSpec((bm, Dm), lambda m: (m, 0)),
            pl.BlockSpec((1, Dm), lambda m: (0, 0)),
            pl.BlockSpec((1, Dm), lambda m: (0, 0)),
        ],
        out_specs=pl.BlockSpec((bm, Dm), lambda m: (m, 0)),
        compiler_params=pltpu.CompilerParams(dimension_semantics=("parallel",)),
    )(x, w, b.reshape(1, Dm), res, gamma.reshape(1, Dm), beta.reshape(1, Dm))


# ---------------------------------------------------------------------------
# Full module forward
# ---------------------------------------------------------------------------
def init_params(key, n_head, d_model, d_k, d_v):
    ks = jax.random.split(key, 6)
    s = 0.05

    def lin(k, din, dout):
        kw, kb = jax.random.split(k)
        return (jax.random.normal(kw, (din, dout), jnp.float32) * s,
                jax.random.normal(kb, (dout,), jnp.float32) * s)

    p = {}
    p["W_Q"], p["b_Q"] = lin(ks[0], d_model, n_head * d_k)
    p["W_K"], p["b_K"] = lin(ks[1], d_model, n_head * d_k)
    p["W_V"], p["b_V"] = lin(ks[2], d_model, n_head * d_v)
    p["W_V_2"], p["b_V_2"] = lin(ks[3], d_model, n_head * d_v)
    p["W_O"], p["b_O"] = lin(ks[4], n_head * d_v, d_model)
    p["W_O_2"], p["b_O_2"] = lin(ks[5], n_head * d_v, d_model)
    p["ln_gamma"] = jnp.ones((d_model,), jnp.float32)
    p["ln_beta"] = jnp.zeros((d_model,), jnp.float32)
    # layer_norm_2 / dropout_2 exist in __init__ but are unused in forward.
    return p


def multi_head_attention_reciprocal(params, q, k, v, v_2, n_head, d_k, d_v,
                                    compute_dtype=jnp.bfloat16,
                                    attn_dtype=jnp.float32, eps=1e-5):
    B, Lq, Dm = q.shape
    Lk = k.shape[1]
    assert v.shape[1] == Lk, "len_v must equal len_k"
    assert v_2.shape[1] == Lq, "len_v_2 must equal len_q"
    H = n_head

    # fold 1/sqrt(d_k) into the Q projection (exact, zero runtime cost)
    scale = 1.0 / math.sqrt(d_k)
    wq = (params["W_Q"] * scale).astype(compute_dtype)
    bq = params["b_Q"] * scale
    wk = params["W_K"].astype(compute_dtype)
    wv = params["W_V"].astype(compute_dtype)
    wv2 = params["W_V_2"].astype(compute_dtype)

    # bf16 activations into the (memory-bound) projection kernels
    qf = q.reshape(B * Lq, Dm).astype(compute_dtype)
    v2f = v_2.reshape(B * Lq, Dm).astype(compute_dtype)
    kf = k.reshape(B * Lk, Dm).astype(compute_dtype)
    vf = v.reshape(B * Lk, Dm).astype(compute_dtype)

    # --- fused projections (q-side and k-side share M tiling) ---
    Qp, V2p = dual_linear(qf, wq, bq, v2f, wv2, params["b_V_2"],
                          out_dtype=compute_dtype)
    Kp, Vp = dual_linear(kf, wk, params["b_K"], vf, wv, params["b_V"],
                         out_dtype=compute_dtype)

    # head-major layout [B, H, L, d] (mirrors the module's .transpose(1, 2));
    # keeps every attention block fully aligned and per-(b, h) in the grid.
    Qh = Qp.reshape(B, Lq, H, d_k).transpose(0, 2, 1, 3)
    Kh = Kp.reshape(B, Lk, H, d_k).transpose(0, 2, 1, 3)
    Vh = Vp.reshape(B, Lk, H, d_v).transpose(0, 2, 1, 3)
    V2h = V2p.reshape(B, Lq, H, d_v).transpose(0, 2, 1, 3)

    attention, attention_2, O1h, O2h = attention_heads(
        Qh, Kh, Vh, V2h, attn_dtype=attn_dtype, head_out_dtype=compute_dtype)

    # concat heads back to a lane-dense [rows, H*d_v] slab
    # (mirrors .transpose(1, 2).reshape in the module)
    O1 = O1h.transpose(0, 2, 1, 3).reshape(B * Lq, H * d_v)
    O2 = O2h.transpose(0, 2, 1, 3).reshape(B * Lk, H * d_v)

    wo = params["W_O"].astype(compute_dtype)
    wo2 = params["W_O_2"].astype(compute_dtype)

    # dropout = identity (eval mode); layer_norm (not layer_norm_2) on both branches
    output = proj_residual_ln(
        O1, wo, params["b_O"], q.reshape(B * Lq, Dm),
        params["ln_gamma"], params["ln_beta"],
        eps=eps, out_dtype=q.dtype).reshape(B, Lq, Dm)
    output_2 = proj_residual_ln(
        O2, wo2, params["b_O_2"], k.reshape(B * Lk, Dm),
        params["ln_gamma"], params["ln_beta"],
        eps=eps, out_dtype=q.dtype).reshape(B, Lk, Dm)

    return output, output_2, attention, attention_2


# ---------------------------------------------------------------------------
# Pure-JAX reference (f32) for a loose numerical sanity check
# ---------------------------------------------------------------------------
def reference_forward(params, q, k, v, v_2, n_head, d_k, d_v, eps=1e-5):
    B, Lq, Dm = q.shape
    Lk = k.shape[1]

    def lin(x, w, b):
        return x @ w + b

    Q = lin(q, params["W_Q"], params["b_Q"]).reshape(B, Lq, n_head, d_k).transpose(0, 2, 1, 3)
    K = lin(k, params["W_K"], params["b_K"]).reshape(B, Lk, n_head, d_k).transpose(0, 2, 1, 3)
    V = lin(v, params["W_V"], params["b_V"]).reshape(B, Lk, n_head, d_v).transpose(0, 2, 1, 3)
    V2 = lin(v_2, params["W_V_2"], params["b_V_2"]).reshape(B, Lq, n_head, d_v).transpose(0, 2, 1, 3)

    S = jnp.einsum("bhqd,bhkd->bhqk", Q, K) / jnp.sqrt(jnp.float32(d_k))
    attn = jax.nn.softmax(S, axis=-1)
    attn2 = jax.nn.softmax(jnp.swapaxes(S, -1, -2), axis=-1)
    oh = jnp.einsum("bhqk,bhkd->bhqd", attn, V)
    oh2 = jnp.einsum("bhkq,bhqd->bhkd", attn2, V2)
    concat = oh.transpose(0, 2, 1, 3).reshape(B, Lq, n_head * d_v)
    concat2 = oh2.transpose(0, 2, 1, 3).reshape(B, Lk, n_head * d_v)

    def ln(x):
        mu = x.mean(-1, keepdims=True)
        var = ((x - mu) ** 2).mean(-1, keepdims=True)
        return (x - mu) / jnp.sqrt(var + eps) * params["ln_gamma"] + params["ln_beta"]

    out = ln(concat @ params["W_O"] + params["b_O"] + q)
    out2 = ln(concat2 @ params["W_O_2"] + params["b_O_2"] + k)
    return out, out2, attn, attn2


if __name__ == "__main__":
    n_head, d_model, d_k, d_v = 2, 32, 16, 16
    B, Lq, Lk = 2, 8, 8   # len_v == len_k, len_v_2 == len_q (required by the math)

    key = jax.random.PRNGKey(0)
    kp, kq, kk, kv, kv2 = jax.random.split(key, 5)
    params = init_params(kp, n_head, d_model, d_k, d_v)

    q = jax.random.normal(kq, (B, Lq, d_model), jnp.float32)
    k = jax.random.normal(kk, (B, Lk, d_model), jnp.float32)
    v = jax.random.normal(kv, (B, Lk, d_model), jnp.float32)
    v_2 = jax.random.normal(kv2, (B, Lq, d_model), jnp.float32)

    fwd = jax.jit(functools.partial(multi_head_attention_reciprocal,
                                    n_head=n_head, d_k=d_k, d_v=d_v))
    out, out2, attn, attn2 = fwd(params, q, k, v, v_2)
    jax.block_until_ready((out, out2, attn, attn2))

    assert out.shape == (B, Lq, d_model)
    assert out2.shape == (B, Lk, d_model)
    assert attn.shape == (B, n_head, Lq, Lk)
    assert attn2.shape == (B, n_head, Lk, Lq)

    # loose tolerance: bf16 MXU operands/activations + approx reciprocal vs f32 ref
    r_out, r_out2, r_attn, r_attn2 = reference_forward(
        params, q, k, v, v_2, n_head, d_k, d_v)
    tol = 5e-2
    assert float(jnp.max(jnp.abs(out - r_out))) < tol
    assert float(jnp.max(jnp.abs(out2 - r_out2))) < tol
    assert float(jnp.max(jnp.abs(attn - r_attn))) < tol
    assert float(jnp.max(jnp.abs(attn2 - r_attn2))) < tol

    print("KERNEL_OK")
</pallas_src>

<mosaic_0001>
module attributes {stable_mosaic.version = 11 : i64} {
  func.func @_dual_linear_kernel(%arg0: i32, %arg1: memref<16x32xbf16, #tpu.memory_space<vmem>>, %arg2: memref<32x32xbf16, #tpu.memory_space<vmem>>, %arg3: memref<1x32xf32, #tpu.memory_space<vmem>>, %arg4: memref<16x32xbf16, #tpu.memory_space<vmem>>, %arg5: memref<32x32xbf16, #tpu.memory_space<vmem>>, %arg6: memref<1x32xf32, #tpu.memory_space<vmem>>, %arg7: memref<16x32xbf16, #tpu.memory_space<vmem>>, %arg8: memref<16x32xbf16, #tpu.memory_space<vmem>>) attributes {dimension_semantics = [#tpu.dimension_semantics<parallel>], iteration_bounds = array<i64: 1>, scalar_prefetch = 0 : i64, scratch_operands = 0 : i64, tpu.core_type = #tpu.core_type<tc>, window_params = [{transform_indices = @transform_0, window_bounds = array<i64: 16, 32>}, {pipeline_mode = #tpu.pipeline_mode<synchronous>, transform_indices = @transform_1, window_bounds = array<i64: 32, 32>}, {pipeline_mode = #tpu.pipeline_mode<synchronous>, transform_indices = @transform_2, window_bounds = array<i64: 1, 32>}, {transform_indices = @transform_3, window_bounds = array<i64: 16, 32>}, {pipeline_mode = #tpu.pipeline_mode<synchronous>, transform_indices = @transform_4, window_bounds = array<i64: 32, 32>}, {pipeline_mode = #tpu.pipeline_mode<synchronous>, transform_indices = @transform_5, window_bounds = array<i64: 1, 32>}, {transform_indices = @transform_6, window_bounds = array<i64: 16, 32>}, {transform_indices = @transform_7, window_bounds = array<i64: 16, 32>}]} {
    %c0 = arith.constant 0 : index
    %c0_0 = arith.constant 0 : index
    %0 = vector.load %arg1[%c0, %c0_0] : memref<16x32xbf16, #tpu.memory_space<vmem>>, vector<16x32xbf16>
    %c0_1 = arith.constant 0 : index
    %c0_2 = arith.constant 0 : index
    %1 = vector.load %arg2[%c0_1, %c0_2] : memref<32x32xbf16, #tpu.memory_space<vmem>>, vector<32x32xbf16>
    %cst = arith.constant dense<0.000000e+00> : vector<16x32xf32>
    %2 = tpu.matmul %0, %1, %cst {dimension_numbers = #tpu.dot_dimension_numbers<[1], [0], [0], [1], [0, 0, 1, 1], [], []>} : vector<16x32xbf16>, vector<32x32xbf16>, vector<16x32xf32> -> vector<16x32xf32>
    %c0_3 = arith.constant 0 : index
    %c0_4 = arith.constant 0 : index
    %3 = vector.load %arg3[%c0_3, %c0_4] : memref<1x32xf32, #tpu.memory_space<vmem>>, vector<1x32xf32>
    %4 = vector.broadcast %3 : vector<1x32xf32> to vector<16x32xf32>
    %5 = arith.addf %2, %4 : vector<16x32xf32>
    %c0_5 = arith.constant 0 : index
    %c0_6 = arith.constant 0 : index
    %6 = vector.load %arg4[%c0_5, %c0_6] : memref<16x32xbf16, #tpu.memory_space<vmem>>, vector<16x32xbf16>
    %c0_7 = arith.constant 0 : index
    %c0_8 = arith.constant 0 : index
    %7 = vector.load %arg5[%c0_7, %c0_8] : memref<32x32xbf16, #tpu.memory_space<vmem>>, vector<32x32xbf16>
    %cst_9 = arith.constant dense<0.000000e+00> : vector<16x32xf32>
    %8 = tpu.matmul %6, %7, %cst_9 {dimension_numbers = #tpu.dot_dimension_numbers<[1], [0], [0], [1], [0, 0, 1, 1], [], []>} : vector<16x32xbf16>, vector<32x32xbf16>, vector<16x32xf32> -> vector<16x32xf32>
    %c0_10 = arith.constant 0 : index
    %c0_11 = arith.constant 0 : index
    %9 = vector.load %arg6[%c0_10, %c0_11] : memref<1x32xf32, #tpu.memory_space<vmem>>, vector<1x32xf32>
    %10 = vector.broadcast %9 : vector<1x32xf32> to vector<16x32xf32>
    %11 = arith.addf %8, %10 : vector<16x32xf32>
    %12 = arith.truncf %5 : vector<16x32xf32> to vector<16x32xbf16>
    %c0_12 = arith.constant 0 : index
    %c0_13 = arith.constant 0 : index
    %13 = vector.load %arg7[%c0_12, %c0_13] : memref<16x32xbf16, #tpu.memory_space<vmem>>, vector<16x32xbf16>
    tpu.vector_store %arg7[%c0_12, %c0_13], %12 {strides = array<i32>} : memref<16x32xbf16, #tpu.memory_space<vmem>>, vector<16x32xbf16>,
    %14 = arith.truncf %11 : vector<16x32xf32> to vector<16x32xbf16>
    %c0_14 = arith.constant 0 : index
    %c0_15 = arith.constant 0 : index
    %15 = vector.load %arg8[%c0_14, %c0_15] : memref<16x32xbf16, #tpu.memory_space<vmem>>, vector<16x32xbf16>
    tpu.vector_store %arg8[%c0_14, %c0_15], %14 {strides = array<i32>} : memref<16x32xbf16, #tpu.memory_space<vmem>>, vector<16x32xbf16>,
    return
  }
  func.func @transform_0(%arg0: i32) -> (i32, i32) {
    %c0_i32 = arith.constant 0 : i32
    %c0_i32_0 = arith.constant 0 : i32
    return %arg0, %c0_i32 : i32, i32
  }
  func.func @transform_1(%arg0: i32) -> (i32, i32) {
    %c0_i32 = arith.constant 0 : i32
    %c0_i32_0 = arith.constant 0 : i32
    %c0_i32_1 = arith.constant 0 : i32
    return %c0_i32, %c0_i32_0 : i32, i32
  }
  func.func @transform_2(%arg0: i32) -> (i32, i32) {
    %c0_i32 = arith.constant 0 : i32
    %c0_i32_0 = arith.constant 0 : i32
    %c0_i32_1 = arith.constant 0 : i32
    return %c0_i32, %c0_i32_0 : i32, i32
  }
  func.func @transform_3(%arg0: i32) -> (i32, i32) {
    %c0_i32 = arith.constant 0 : i32
    %c0_i32_0 = arith.constant 0 : i32
    return %arg0, %c0_i32 : i32, i32
  }
  func.func @transform_4(%arg0: i32) -> (i32, i32) {
    %c0_i32 = arith.constant 0 : i32
    %c0_i32_0 = arith.constant 0 : i32
    %c0_i32_1 = arith.constant 0 : i32
    return %c0_i32, %c0_i32_0 : i32, i32
  }
  func.func @transform_5(%arg0: i32) -> (i32, i32) {
    %c0_i32 = arith.constant 0 : i32
    %c0_i32_0 = arith.constant 0 : i32
    %c0_i32_1 = arith.constant 0 : i32
    return %c0_i32, %c0_i32_0 : i32, i32
  }
  func.func @transform_6(%arg0: i32) -> (i32, i32) {
    %c0_i32 = arith.constant 0 : i32
    %c0_i32_0 = arith.constant 0 : i32
    return %arg0, %c0_i32 : i32, i32
  }
  func.func @transform_7(%arg0: i32) -> (i32, i32) {
    %c0_i32 = arith.constant 0 : i32
    %c0_i32_0 = arith.constant 0 : i32
    return %arg0, %c0_i32 : i32, i32
  }
}

module attributes {stable_mosaic.version = 11 : i64} {
  func.func @_proj_residual_ln_kernel(%arg0: i32, %arg1: memref<16x32xbf16, #tpu.memory_space<vmem>>, %arg2: memref<32x32xbf16, #tpu.memory_space<vmem>>, %arg3: memref<1x32xf32, #tpu.memory_space<vmem>>, %arg4: memref<16x32xf32, #tpu.memory_space<vmem>>, %arg5: memref<1x32xf32, #tpu.memory_space<vmem>>, %arg6: memref<1x32xf32, #tpu.memory_space<vmem>>, %arg7: memref<16x32xf32, #tpu.memory_space<vmem>>) attributes {dimension_semantics = [#tpu.dimension_semantics<parallel>], iteration_bounds = array<i64: 1>, scalar_prefetch = 0 : i64, scratch_operands = 0 : i64, tpu.core_type = #tpu.core_type<tc>, window_params = [{transform_indices = @transform_0, window_bounds = array<i64: 16, 32>}, {pipeline_mode = #tpu.pipeline_mode<synchronous>, transform_indices = @transform_1, window_bounds = array<i64: 32, 32>}, {pipeline_mode = #tpu.pipeline_mode<synchronous>, transform_indices = @transform_2, window_bounds = array<i64: 1, 32>}, {transform_indices = @transform_3, window_bounds = array<i64: 16, 32>}, {pipeline_mode = #tpu.pipeline_mode<synchronous>, transform_indices = @transform_4, window_bounds = array<i64: 1, 32>}, {pipeline_mode = #tpu.pipeline_mode<synchronous>, transform_indices = @transform_5, window_bounds = array<i64: 1, 32>}, {transform_indices = @transform_6, window_bounds = array<i64: 16, 32>}]} {
    %c0 = arith.constant 0 : index
    %c0_0 = arith.constant 0 : index
    %0 = vector.load %arg1[%c0, %c0_0] : memref<16x32xbf16, #tpu.memory_space<vmem>>, vector<16x32xbf16>
    %c0_1 = arith.constant 0 : index
    %c0_2 = arith.constant 0 : index
    %1 = vector.load %arg2[%c0_1, %c0_2] : memref<32x32xbf16, #tpu.memory_space<vmem>>, vector<32x32xbf16>
    %cst = arith.constant dense<0.000000e+00> : vector<16x32xf32>
    %2 = tpu.matmul %0, %1, %cst {dimension_numbers = #tpu.dot_dimension_numbers<[1], [0], [0], [1], [0, 0, 1, 1], [], []>} : vector<16x32xbf16>, vector<32x32xbf16>, vector<16x32xf32> -> vector<16x32xf32>
    %c0_3 = arith.constant 0 : index
    %c0_4 = arith.constant 0 : index
    %3 = vector.load %arg3[%c0_3, %c0_4] : memref<1x32xf32, #tpu.memory_space<vmem>>, vector<1x32xf32>
    %4 = vector.broadcast %3 : vector<1x32xf32> to vector<16x32xf32>
    %5 = arith.addf %2, %4 : vector<16x32xf32>
    %c0_5 = arith.constant 0 : index
    %c0_6 = arith.constant 0 : index
    %6 = vector.load %arg4[%c0_5, %c0_6] : memref<16x32xf32, #tpu.memory_space<vmem>>, vector<16x32xf32>
    %7 = arith.addf %5, %6 : vector<16x32xf32>
    %cst_7 = arith.constant dense<0.000000e+00> : vector<16xf32>
    %8 = vector.multi_reduction <add>, %7, %cst_7 [1] : vector<16x32xf32> to vector<16xf32>
    %9 = vector.shape_cast %8 : vector<16xf32> to vector<16x1xf32>
    %cst_8 = arith.constant 3.200000e+01 : f32
    %10 = vector.broadcast %cst_8 : f32 to vector<16x1xf32>
    %11 = arith.divf %9, %10 : vector<16x1xf32>
    %12 = vector.broadcast %11 : vector<16x1xf32> to vector<16x32xf32>
    %13 = arith.subf %7, %12 : vector<16x32xf32>
    %14 = vector.broadcast %11 : vector<16x1xf32> to vector<16x32xf32>
    %15 = arith.subf %7, %14 : vector<16x32xf32>
    %16 = arith.mulf %13, %15 : vector<16x32xf32>
    %cst_9 = arith.constant dense<0.000000e+00> : vector<16xf32>
    %17 = vector.multi_reduction <add>, %16, %cst_9 [1] : vector<16x32xf32> to vector<16xf32>
    %18 = vector.shape_cast %17 : vector<16xf32> to vector<16x1xf32>
    %cst_10 = arith.constant 3.200000e+01 : f32
    %19 = vector.broadcast %cst_10 : f32 to vector<16x1xf32>
    %20 = arith.divf %18, %19 : vector<16x1xf32>
    %21 = vector.broadcast %11 : vector<16x1xf32> to vector<16x32xf32>
    %22 = arith.subf %7, %21 : vector<16x32xf32>
    %cst_11 = arith.constant 9.99999974E-6 : f32
    %23 = vector.broadcast %cst_11 : f32 to vector<16x1xf32>
    %24 = arith.addf %20, %23 : vector<16x1xf32>
    %25 = math.rsqrt %24 : vector<16x1xf32>
    %26 = vector.broadcast %25 : vector<16x1xf32> to vector<16x32xf32>
    %27 = arith.mulf %22, %26 : vector<16x32xf32>
    %c0_12 = arith.constant 0 : index
    %c0_13 = arith.constant 0 : index
    %28 = vector.load %arg5[%c0_12, %c0_13] : memref<1x32xf32, #tpu.memory_space<vmem>>, vector<1x32xf32>
    %29 = vector.broadcast %28 : vector<1x32xf32> to vector<16x32xf32>
    %30 = arith.mulf %27, %29 : vector<16x32xf32>
    %c0_14 = arith.constant 0 : index
    %c0_15 = arith.constant 0 : index
    %31 = vector.load %arg6[%c0_14, %c0_15] : memref<1x32xf32, #tpu.memory_space<vmem>>, vector<1x32xf32>
    %32 = vector.broadcast %31 : vector<1x32xf32> to vector<16x32xf32>
    %33 = arith.addf %30, %32 : vector<16x32xf32>
    %c0_16 = arith.constant 0 : index
    %c0_17 = arith.constant 0 : index
    %34 = vector.load %arg7[%c0_16, %c0_17] : memref<16x32xf32, #tpu.memory_space<vmem>>, vector<16x32xf32>
    tpu.vector_store %arg7[%c0_16, %c0_17], %33 {strides = array<i32>} : memref<16x32xf32, #tpu.memory_space<vmem>>, vector<16x32xf32>,
    return
  }
  func.func @transform_0(%arg0: i32) -> (i32, i32) {
    %c0_i32 = arith.constant 0 : i32
    %c0_i32_0 = arith.constant 0 : i32
    return %arg0, %c0_i32 : i32, i32
  }
  func.func @transform_1(%arg0: i32) -> (i32, i32) {
    %c0_i32 = arith.constant 0 : i32
    %c0_i32_0 = arith.constant 0 : i32
    %c0_i32_1 = arith.constant 0 : i32
    return %c0_i32, %c0_i32_0 : i32, i32
  }
  func.func @transform_2(%arg0: i32) -> (i32, i32) {
    %c0_i32 = arith.constant 0 : i32
    %c0_i32_0 = arith.constant 0 : i32
    %c0_i32_1 = arith.constant 0 : i32
    return %c0_i32, %c0_i32_0 : i32, i32
  }
  func.func @transform_3(%arg0: i32) -> (i32, i32) {
    %c0_i32 = arith.constant 0 : i32
    %c0_i32_0 = arith.constant 0 : i32
    return %arg0, %c0_i32 : i32, i32
  }
  func.func @transform_4(%arg0: i32) -> (i32, i32) {
    %c0_i32 = arith.constant 0 : i32
    %c0_i32_0 = arith.constant 0 : i32
    %c0_i32_1 = arith.constant 0 : i32
    return %c0_i32, %c0_i32_0 : i32, i32
  }
  func.func @transform_5(%arg0: i32) -> (i32, i32) {
    %c0_i32 = arith.constant 0 : i32
    %c0_i32_0 = arith.constant 0 : i32
    %c0_i32_1 = arith.constant 0 : i32
    return %c0_i32, %c0_i32_0 : i32, i32
  }
  func.func @transform_6(%arg0: i32) -> (i32, i32) {
    %c0_i32 = arith.constant 0 : i32
    %c0_i32_0 = arith.constant 0 : i32
    return %arg0, %c0_i32 : i32, i32
  }
}

module attributes {stable_mosaic.version = 11 : i64} {
  func.func @_attn_head_kernel(%arg0: i32, %arg1: i32, %arg2: memref<1x1x8x16xbf16, #tpu.memory_space<vmem>>, %arg3: memref<1x1x8x16xbf16, #tpu.memory_space<vmem>>, %arg4: memref<1x1x8x16xbf16, #tpu.memory_space<vmem>>, %arg5: memref<1x1x8x16xbf16, #tpu.memory_space<vmem>>, %arg6: memref<1x1x8x8xf32, #tpu.memory_space<vmem>>, %arg7: memref<1x1x8x8xf32, #tpu.memory_space<vmem>>, %arg8: memref<1x1x8x16xbf16, #tpu.memory_space<vmem>>, %arg9: memref<1x1x8x16xbf16, #tpu.memory_space<vmem>>) attributes {dimension_semantics = [#tpu.dimension_semantics<parallel>, #tpu.dimension_semantics<parallel>], iteration_bounds = array<i64: 2, 2>, scalar_prefetch = 0 : i64, scratch_operands = 0 : i64, tpu.core_type = #tpu.core_type<tc>, window_params = [{transform_indices = @transform_0, window_bounds = array<i64: 1, 1, 8, 16>}, {transform_indices = @transform_1, window_bounds = array<i64: 1, 1, 8, 16>}, {transform_indices = @transform_2, window_bounds = array<i64: 1, 1, 8, 16>}, {transform_indices = @transform_3, window_bounds = array<i64: 1, 1, 8, 16>}, {transform_indices = @transform_4, window_bounds = array<i64: 1, 1, 8, 8>}, {transform_indices = @transform_5, window_bounds = array<i64: 1, 1, 8, 8>}, {transform_indices = @transform_6, window_bounds = array<i64: 1, 1, 8, 16>}, {transform_indices = @transform_7, window_bounds = array<i64: 1, 1, 8, 16>}]} {
    %c0 = arith.constant 0 : index
    %c0_0 = arith.constant 0 : index
    %c0_1 = arith.constant 0 : index
    %c0_2 = arith.constant 0 : index
    %0 = vector.load %arg2[%c0, %c0_0, %c0_1, %c0_2] : memref<1x1x8x16xbf16, #tpu.memory_space<vmem>>, vector<1x1x8x16xbf16>
    %1 = vector.shape_cast %0 : vector<1x1x8x16xbf16> to vector<8x16xbf16>
    %c0_3 = arith.constant 0 : index
    %c0_4 = arith.constant 0 : index
    %c0_5 = arith.constant 0 : index
    %c0_6 = arith.constant 0 : index
    %2 = vector.load %arg3[%c0_3, %c0_4, %c0_5, %c0_6] : memref<1x1x8x16xbf16, #tpu.memory_space<vmem>>, vector<1x1x8x16xbf16>
    %3 = vector.shape_cast %2 : vector<1x1x8x16xbf16> to vector<8x16xbf16>
    %c0_7 = arith.constant 0 : index
    %c0_8 = arith.constant 0 : index
    %c0_9 = arith.constant 0 : index
    %c0_10 = arith.constant 0 : index
    %4 = vector.load %arg4[%c0_7, %c0_8, %c0_9, %c0_10] : memref<1x1x8x16xbf16, #tpu.memory_space<vmem>>, vector<1x1x8x16xbf16>
    %5 = vector.shape_cast %4 : vector<1x1x8x16xbf16> to vector<8x16xbf16>
    %c0_11 = arith.constant 0 : index
    %c0_12 = arith.constant 0 : index
    %c0_13 = arith.constant 0 : index
    %c0_14 = arith.constant 0 : index
    %6 = vector.load %arg5[%c0_11, %c0_12, %c0_13, %c0_14] : memref<1x1x8x16xbf16, #tpu.memory_space<vmem>>, vector<1x1x8x16xbf16>
    %7 = vector.shape_cast %6 : vector<1x1x8x16xbf16> to vector<8x16xbf16>
    %cst = arith.constant dense<0.000000e+00> : vector<8x8xf32>
    %8 = tpu.matmul %1, %3, %cst {dimension_numbers = #tpu.dot_dimension_numbers<[1], [1], [0], [0], [0, 0, 1, 0], [], []>} : vector<8x16xbf16>, vector<8x16xbf16>, vector<8x8xf32> -> vector<8x8xf32>
    %cst_15 = arith.constant dense<0xFF800000> : vector<8xf32>
    %9 = vector.multi_reduction <maximumf>, %8, %cst_15 [1] : vector<8x8xf32> to vector<8xf32>
    %10 = vector.shape_cast %9 : vector<8xf32> to vector<8x1xf32>
    %11 = vector.broadcast %10 : vector<8x1xf32> to vector<8x8xf32>
    %12 = arith.subf %8, %11 : vector<8x8xf32>
    %13 = math.exp %12 : vector<8x8xf32>
    %cst_16 = arith.constant dense<0.000000e+00> : vector<8xf32>
    %14 = vector.multi_reduction <add>, %13, %cst_16 [1] : vector<8x8xf32> to vector<8xf32>
    %15 = vector.shape_cast %14 : vector<8xf32> to vector<8x1xf32>
    %16 = tpu.reciprocal %15 {approx = true} : vector<8x1xf32> -> vector<8x1xf32>
    %17 = vector.broadcast %16 : vector<8x1xf32> to vector<8x8xf32>
    %18 = arith.mulf %13, %17 : vector<8x8xf32>
    %cst_17 = arith.constant dense<0xFF800000> : vector<8xf32>
    %19 = vector.multi_reduction <maximumf>, %8, %cst_17 [0] : vector<8x8xf32> to vector<8xf32>
    %20 = vector.shape_cast %19 : vector<8xf32> to vector<1x8xf32>
    %21 = vector.broadcast %20 : vector<1x8xf32> to vector<8x8xf32>
    %22 = arith.subf %8, %21 : vector<8x8xf32>
    %23 = math.exp %22 : vector<8x8xf32>
    %cst_18 = arith.constant dense<0.000000e+00> : vector<8xf32>
    %24 = vector.multi_reduction <add>, %23, %cst_18 [0] : vector<8x8xf32> to vector<8xf32>
    %25 = vector.shape_cast %24 : vector<8xf32> to vector<1x8xf32>
    %26 = tpu.reciprocal %25 {approx = true} : vector<1x8xf32> -> vector<1x8xf32>
    %27 = vector.broadcast %26 : vector<1x8xf32> to vector<8x8xf32>
    %28 = arith.mulf %23, %27 : vector<8x8xf32>
    %c0_19 = arith.constant 0 : index
    %c0_20 = arith.constant 0 : index
    %c0_21 = arith.constant 0 : index
    %c0_22 = arith.constant 0 : index
    %29 = vector.load %arg6[%c0_19, %c0_20, %c0_21, %c0_22] : memref<1x1x8x8xf32, #tpu.memory_space<vmem>>, vector<1x1x8x8xf32>
    %30 = vector.shape_cast %29 : vector<1x1x8x8xf32> to vector<8x8xf32>
    %31 = vector.shape_cast %18 : vector<8x8xf32> to vector<1x1x8x8xf32>
    tpu.vector_store %arg6[%c0_19, %c0_20, %c0_21, %c0_22], %31 {strides = array<i32>} : memref<1x1x8x8xf32, #tpu.memory_space<vmem>>, vector<1x1x8x8xf32>,
    %32 = tpu.transpose %28, [1, 0] : vector<8x8xf32> -> vector<8x8xf32>
    %c0_23 = arith.constant 0 : index
    %c0_24 = arith.constant 0 : index
    %c0_25 = arith.constant 0 : index
    %c0_26 = arith.constant 0 : index
    %33 = vector.load %arg7[%c0_23, %c0_24, %c0_25, %c0_26] : memref<1x1x8x8xf32, #tpu.memory_space<vmem>>, vector<1x1x8x8xf32>
    %34 = vector.shape_cast %33 : vector<1x1x8x8xf32> to vector<8x8xf32>
    %35 = vector.shape_cast %32 : vector<8x8xf32> to vector<1x1x8x8xf32>
    tpu.vector_store %arg7[%c0_23, %c0_24, %c0_25, %c0_26], %35 {strides = array<i32>} : memref<1x1x8x8xf32, #tpu.memory_space<vmem>>, vector<1x1x8x8xf32>,
    %36 = arith.truncf %18 : vector<8x8xf32> to vector<8x8xbf16>
    %cst_27 = arith.constant dense<0.000000e+00> : vector<8x16xf32>
    %37 = tpu.matmul %36, %5, %cst_27 {dimension_numbers = #tpu.dot_dimension_numbers<[1], [0], [0], [1], [0, 0, 1, 1], [], []>} : vector<8x8xbf16>, vector<8x16xbf16>, vector<8x16xf32> -> vector<8x16xf32>
    %38 = arith.truncf %28 : vector<8x8xf32> to vector<8x8xbf16>
    %cst_28 = arith.constant dense<0.000000e+00> : vector<8x16xf32>
    %39 = tpu.matmul %38, %7, %cst_28 {dimension_numbers = #tpu.dot_dimension_numbers<[0], [0], [1], [1], [0, 1, 1, 1], [], []>} : vector<8x8xbf16>, vector<8x16xbf16>, vector<8x16xf32> -> vector<8x16xf32>
    %40 = arith.truncf %37 : vector<8x16xf32> to vector<8x16xbf16>
    %c0_29 = arith.constant 0 : index
    %c0_30 = arith.constant 0 : index
    %c0_31 = arith.constant 0 : index
    %c0_32 = arith.constant 0 : index
    %41 = vector.load %arg8[%c0_29, %c0_30, %c0_31, %c0_32] : memref<1x1x8x16xbf16, #tpu.memory_space<vmem>>, vector<1x1x8x16xbf16>
    %42 = vector.shape_cast %41 : vector<1x1x8x16xbf16> to vector<8x16xbf16>
    %43 = vector.shape_cast %40 : vector<8x16xbf16> to vector<1x1x8x16xbf16>
    tpu.vector_store %arg8[%c0_29, %c0_30, %c0_31, %c0_32], %43 {strides = array<i32>} : memref<1x1x8x16xbf16, #tpu.memory_space<vmem>>, vector<1x1x8x16xbf16>,
    %44 = arith.truncf %39 : vector<8x16xf32> to vector<8x16xbf16>
    %c0_33 = arith.constant 0 : index
    %c0_34 = arith.constant 0 : index
    %c0_35 = arith.constant 0 : index
    %c0_36 = arith.constant 0 : index
    %45 = vector.load %arg9[%c0_33, %c0_34, %c0_35, %c0_36] : memref<1x1x8x16xbf16, #tpu.memory_space<vmem>>, vector<1x1x8x16xbf16>
    %46 = vector.shape_cast %45 : vector<1x1x8x16xbf16> to vector<8x16xbf16>
    %47 = vector.shape_cast %44 : vector<8x16xbf16> to vector<1x1x8x16xbf16>
    tpu.vector_store %arg9[%c0_33, %c0_34, %c0_35, %c0_36], %47 {strides = array<i32>} : memref<1x1x8x16xbf16, #tpu.memory_space<vmem>>, vector<1x1x8x16xbf16>,
    return
  }
  func.func @transform_0(%arg0: i32, %arg1: i32) -> (i32, i32, i32, i32) {
    %c0_i32 = arith.constant 0 : i32
    %c0_i32_0 = arith.constant 0 : i32
    %c0_i32_1 = arith.constant 0 : i32
    return %arg0, %arg1, %c0_i32, %c0_i32_0 : i32, i32, i32, i32
  }
  func.func @transform_1(%arg0: i32, %arg1: i32) -> (i32, i32, i32, i32) {
    %c0_i32 = arith.constant 0 : i32
    %c0_i32_0 = arith.constant 0 : i32
    %c0_i32_1 = arith.constant 0 : i32
    return %arg0, %arg1, %c0_i32, %c0_i32_0 : i32, i32, i32, i32
  }
  func.func @transform_2(%arg0: i32, %arg1: i32) -> (i32, i32, i32, i32) {
    %c0_i32 = arith.constant 0 : i32
    %c0_i32_0 = arith.constant 0 : i32
    %c0_i32_1 = arith.constant 0 : i32
    return %arg0, %arg1, %c0_i32, %c0_i32_0 : i32, i32, i32, i32
  }
  func.func @transform_3(%arg0: i32, %arg1: i32) -> (i32, i32, i32, i32) {
    %c0_i32 = arith.constant 0 : i32
    %c0_i32_0 = arith.constant 0 : i32
    %c0_i32_1 = arith.constant 0 : i32
    return %arg0, %arg1, %c0_i32, %c0_i32_0 : i32, i32, i32, i32
  }
  func.func @transform_4(%arg0: i32, %arg1: i32) -> (i32, i32, i32, i32) {
    %c0_i32 = arith.constant 0 : i32
    %c0_i32_0 = arith.constant 0 : i32
    %c0_i32_1 = arith.constant 0 : i32
    return %arg0, %arg1, %c0_i32, %c0_i32_0 : i32, i32, i32, i32
  }
  func.func @transform_5(%arg0: i32, %arg1: i32) -> (i32, i32, i32, i32) {
    %c0_i32 = arith.constant 0 : i32
    %c0_i32_0 = arith.constant 0 : i32
    %c0_i32_1 = arith.constant 0 : i32
    return %arg0, %arg1, %c0_i32, %c0_i32_0 : i32, i32, i32, i32
  }
  func.func @transform_6(%arg0: i32, %arg1: i32) -> (i32, i32, i32, i32) {
    %c0_i32 = arith.constant 0 : i32
    %c0_i32_0 = arith.constant 0 : i32
    %c0_i32_1 = arith.constant 0 : i32
    return %arg0, %arg1, %c0_i32, %c0_i32_0 : i32, i32, i32, i32
  }
  func.func @transform_7(%arg0: i32, %arg1: i32) -> (i32, i32, i32, i32) {
    %c0_i32 = arith.constant 0 : i32
    %c0_i32_0 = arith.constant 0 : i32
    %c0_i32_1 = arith.constant 0 : i32
    return %arg0, %arg1, %c0_i32, %c0_i32_0 : i32, i32, i32, i32
  }
}

</mosaic_0001>

<bundles_post_ra>
// kernel: multi_head_attention_reciprocal.6
= control target key start
LH: loop header
LB: loop body
LE: loop exit
PB: predicated region body
PF: predicated region fallthrough
CT: control target
= control target key end

     0   :  { %v252_v0 = vmov 0.0   ;;  %vm253_vm0 = vmmov 0   ;;  %vm56_vm1 = vcmask 261120   ;;  %vm183_vm2 = vcmask 257024   ;;  %s334_s1 = inlined_call_operand.vmem [shape: bf16[32,32], index: 1, kind: input, shape index: {}]   ;;  %s335_s4 = inlined_call_operand.vmem [shape: bf16[32,32], index: 4, kind: input, shape index: {}]   ;;  %s336_s0 = inlined_call_operand.vmem [shape: bf16[16,32], index: 0, kind: input, shape index: {}]   ;;  %s337_s3 = inlined_call_operand.vmem [shape: bf16[16,32], index: 3, kind: input, shape index: {}]   ;;  %s338_s2 = inlined_call_operand.vmem [shape: f32[1,32], index: 2, kind: input, shape index: {}]   ;;  %s339_s5 = inlined_call_operand.vmem [shape: f32[1,32], index: 5, kind: input, shape index: {}]   ;;  %s340_s6 = inlined_call_operand.vmem [shape: bf16[16,32], index: 6, kind: output, shape index: {0}]   ;;  %s341_s7 = inlined_call_operand.vmem [shape: bf16[16,32], index: 7, kind: output, shape index: {1}]  }
   0x1   :  { %228 = vmatprep.subr.bf16.mxu0 %v252_v0  ;;  %236 = vmatprep.subr.bf16.mxu1 %v252_v0  ;;  %v246_v1 = vld [vmem:[%s334_s1 + $0x8] sm:$0xff]   ;;  %v248_v3 = vld [vmem:[%s334_s1] sm:$0xff]  }
   0x2   :  { %v247_v2 = vld [vmem:[%s335_s4 + $0x8] sm:$0xff]   ;;  %232 = vmatprep.mubr.msk.bf16.mxu0 %vm253_vm0, %v252_v0  ;;  %240 = vmatprep.mubr.msk.bf16.mxu1 %vm253_vm0, %v252_v0  ;;  %v249_v4 = vld [vmem:[%s335_s4] sm:$0xff]  }
   0x3   :  { %229 = vmatpush3.bf16.msra.mxu0 %v246_v1  ;;  %237 = vmatpush3.bf16.msra.mxu1 %v247_v2  ;;  %v250_v5 = vld [vmem:[%s336_s0] sm:$0xff]  }
   0x4   :  { %230 = vmatprep.subr.bf16.mxu0 %v252_v0  ;;  %238 = vmatprep.subr.bf16.mxu1 %v252_v0  ;;  %v251_v6 = vld [vmem:[%s337_s3] sm:$0xff]  }
   0x5   :  { %v204_v7 = vld [vmem:[%s338_s2] ss:$0 sm:$0xff] }
   0x6   :  { %v209_v8 = vld [vmem:[%s339_s5] ss:$0 sm:$0xff] }
   0x7   :  { %231 = vmatpush3.bf16.msra.mxu0 %v248_v3  ;;  %239 = vmatpush3.bf16.msra.mxu1 %v249_v4 }
   0xa   :  { %233 = vmatmul.mubr.msk.bf16.vlgmr.msra.gmra.mxu0 %vm56_vm1, %v250_v5  ;;  %241 = vmatmul.mubr.msk.bf16.vlgmr.msra.gmra.mxu1 %vm56_vm1, %v251_v6 }
  0xca   :  { %v94_v9 = vpop.f32.mrf.mxu0  ;;  %v168_v11 = vpop.f32.mrf.mxu1 }
  0xcb   :  { %v95_v10 = vadd.f32 %v204_v7, %v94_v9  ;;  %v169_v12 = vadd.f32 %v209_v8, %v168_v11 }
  0xcc   :  { %v234_v13 = vpop.f32.mrf.mxu0  ;;  %v242_v15 = vpop.f32.mrf.mxu1 }
  0xcd   :  { %v218_v14 = vpack.c.bf16 %v95_v10, %v95_v10  ;;  %v220_v16 = vpack.c.bf16 %v169_v12, %v169_v12 }
  0xce   :  { %v97_v17 = vpop.f32.mrf.mxu0  ;;  %v171_v19 = vpop.f32.mrf.mxu1 }
  0xcf   :  { %184 = vst.msk [vmem:[%s340_s6] sm:$0xf] %vm183_vm2, %v218_v14  ;;  %v98_v18 = vadd.f32 %v204_v7, %v97_v17  ;;  %194 = vst.msk [vmem:[%s341_s7] sm:$0xf] %vm183_vm2, %v220_v16  ;;  %v172_v20 = vadd.f32 %v209_v8, %v171_v19 }
  0xd0   :  { %v235_v21 = vpop.f32.mrf.mxu0  ;;  %v243_v23 = vpop.f32.mrf.mxu1 }
  0xd1   :  { %v219_v22 = vpack.c.bf16 %v98_v18, %v98_v18  ;;  %v221_v24 = vpack.c.bf16 %v172_v20, %v172_v20 }
  0xd3   :  { %185 = vst.msk [vmem:[%s340_s6 + $0x4] sm:$0xf] %vm183_vm2, %v219_v22  ;;  %195 = vst.msk [vmem:[%s341_s7 + $0x4] sm:$0xf] %vm183_vm2, %v221_v24 }

// kernel: multi_head_attention_reciprocal.8
= control target key start
LH: loop header
LB: loop body
LE: loop exit
PB: predicated region body
PF: predicated region fallthrough
CT: control target
= control target key end

     0   :  { %v219_v1 = vmov 0.0   ;;  %vm220_vm0 = vmmov 0   ;;  %s293_s0 = inlined_call_operand.vmem [shape: bf16[16,32], index: 0, kind: input, shape index: {}]   ;;  %s294_s1 = inlined_call_operand.vmem [shape: bf16[32,32], index: 1, kind: input, shape index: {}]   ;;  %s295_s2 = inlined_call_operand.vmem [shape: f32[1,32], index: 2, kind: input, shape index: {}]   ;;  %s296_s3 = inlined_call_operand.vmem [shape: f32[16,32], index: 3, kind: input, shape index: {}]   ;;  %s297_s4 = inlined_call_operand.vmem [shape: f32[1,32], index: 4, kind: input, shape index: {}]   ;;  %s298_s5 = inlined_call_operand.vmem [shape: f32[1,32], index: 5, kind: input, shape index: {}]   ;;  %s299_s6 = inlined_call_operand.hbm [shape: f32[16,32], index: 6, kind: output, shape index: {}]  }
   0x1   :  { %v190_v0 = vld [vmem:[%s294_s1 + $0x8] sm:$0xff]   ;;  %177 = vmatprep.subr.bf16.mxu0 %v219_v1  ;;  %v191_v2 = vld [vmem:[%s294_s1] sm:$0xff]   ;;  %181 = vmatprep.mubr.msk.bf16.mxu0 %vm220_vm0, %v219_v1 }
   0x2   :  { %178 = vmatpush3.bf16.msra.mxu0 %v190_v0 }
   0x3   :  { %179 = vmatprep.subr.bf16.mxu0 %v219_v1 }
   0x4   :  { %11 = vsyncpa [#allocation3], 0  ;;  %v192_v3 = vld [vmem:[%s293_s0] sm:$0xff]   ;;  %vm55_vm1 = vcmask 261120   ;;  %v101_v11 = vld [vmem:[%s296_s3 + $0x8] sm:$0xff]  ;;  %s221_s9 = smov [#allocation2]  }
   0x5   :  { %v167_v4 = vld [vmem:[%s295_s2] ss:$0 sm:$0xff]  ;;  %s156_s10 = sshll.u32 %s221_s9, 4  ;;  %s157_s10 = int_to_ptr.vmem [resolvable:$true] %s156_s10 }
   0x6   :  { %180 = vmatpush3.bf16.msra.mxu0 %v191_v2  ;;  %v100_v6 = vld [vmem:[%s296_s3] sm:$0xff]  ;;  %s197_s11 = scalar_lea.vmem %s157_s10, 256  ;;  %p202_p1 = scmp.lt.s32.totalorder %s157_s10, %s157_s10 }
   0x7   :  { %v172_v34 = vld [vmem:[%s297_s4] ss:$0 sm:$0xff]  ;;  %p198_p0 = scmp.ne.s32.totalorder %s157_s10, %s197_s11  ;;  %p203_p2 = scmp.lt.s32.totalorder %s197_s11, %s197_s11 }
   0x8   :  { %v173_v36 = vld [vmem:[%s298_s5] ss:$0 sm:$0xff] }
   0x9   :  { %182 = vmatmul.mubr.msk.bf16.vlgmr.msra.gmra.mxu0 %vm55_vm1, %v192_v3  ;;  %p204_p3 = por %p203_p2, %p202_p1 }
   0xb   :  { %p205_p4 = pnand %p204_p3, %p198_p0 }
  0xc9   :  { %v93_v5 = vpop.f32.mrf.mxu0 }
  0xca   :  { %v94_v7 = vadd.f32 %v167_v4, %v93_v5 }
  0xcb   :  { %v183_v8 = vpop.f32.mrf.mxu0 }
  0xcc   :  { %v102_v9 = vadd.f32 %v100_v6, %v94_v7 }
  0xcd   :  { %v96_v10 = vpop.f32.mrf.mxu0 }
  0xce   :  { %v97_v12 = vadd.f32 %v167_v4, %v96_v10  ;;  %v104_v13 = vsel %vm55_vm1, %v102_v9, 0.0 }
  0xcf   :  { %105 = vadd.xlane.f32.xlu0 %v104_v13  ;;  %v184_v14 = vpop.f32.mrf.mxu0 }
  0xd0   :  { %v103_v15 = vadd.f32 %v101_v11, %v97_v12 }
  0xd2   :  { %v107_v16 = vsel %vm55_vm1, %v103_v15, 0.0 }
  0xd3   :  { %108 = vadd.xlane.f32.xlu0 %v107_v16 }
 0x158   :  { %v106_v17 = vpop.xlane.xlu0 %105 }
 0x159   :  { %v111_v18 = vmul.f32 0.03125, %v106_v17 }
 0x15b   :  { %v113_v19 = vsub.f32 %v102_v9, %v111_v18 }
 0x15c   :  { %v109_v20 = vpop.xlane.xlu0 %108 }
 0x15d   :  { %v112_v21 = vmul.f32 0.03125, %v109_v20  ;;  %v115_v22 = vmul.f32 %v113_v19, %v113_v19 }
 0x15f   :  { %v114_v23 = vsub.f32 %v103_v15, %v112_v21  ;;  %v117_v24 = vsel %vm55_vm1, %v115_v22, 0.0 }
 0x160   :  { %118 = vadd.xlane.f32.xlu1 %v117_v24 }
 0x161   :  { %v116_v25 = vmul.f32 %v114_v23, %v114_v23 }
 0x163   :  { %v120_v26 = vsel %vm55_vm1, %v116_v25, 0.0 }
 0x164   :  { %121 = vadd.xlane.f32.xlu1 %v120_v26 }
 0x1e9   :  { %v119_v27 = vpop.xlane.xlu1 %118 }
 0x1ea   :  { %v123_v28 = vmul.f32 0.03125, %v119_v27 }
 0x1ec   :  { %v125_v29 = vadd.f32 1e-05, %v123_v28 }
 0x1ed   :  { %v122_v30 = vpop.xlane.xlu1 %121 }
 0x1ee   :  { %193 = vrsqrt.f32 %v125_v29  ;;  %v124_v31 = vmul.f32 0.03125, %v122_v30 }
 0x1f0   :  { %v126_v32 = vadd.f32 1e-05, %v124_v31 }
 0x1f2   :  { %195 = vrsqrt.f32 %v126_v32 }
 0x1fb   :  { %v194_v33 = vpop.eup %193 }
 0x1fc   :  { %v129_v35 = vmul.f32 %v194_v33, %v113_v19 }
 0x1fe   :  { %v138_v37 = vmul.f32 %v172_v34, %v129_v35 }
 0x1ff   :  { %v196_v38 = vpop.eup %195 }
 0x200   :  { %v130_v39 = vmul.f32 %v196_v38, %v114_v23  ;;  %v147_v40 = vadd.f32 %v173_v36, %v138_v37 }
 0x202   :  { %v139_v41 = vmul.f32 %v172_v34, %v130_v39  ;;  %149 = vst.msk [vmem:[#allocation2] sm:$0xff] %vm55_vm1, %v147_v40 }
 0x204   :  { %v148_v42 = vadd.f32 %v173_v36, %v139_v41 }
 0x206   :  { %150 = vst.msk [vmem:[#allocation2 + $0x8] sm:$0xff] %vm55_vm1, %v148_v42 }
 0x207   :  { %208 = shalt.err (!%p205_p4)
}
 0x208   :  { %s222_s4 = smov 128   ;;  %s223_s5 = smov 8  }
 0x209   :  { %162 = dma.vmem_to_hbm [thread:$0]  %s157_s10, 256, %s299_s6, [#allocation3], %s222_s4, %s222_s4, %s223_s5  }
 0x20a   :  { %217 = dma.done.wait [#allocation3], 256  }
 0x20b   :  { %218 = vsyncadd [#allocation3], 4294967040 }
 0x20c   :  { %166 = vsyncpa [#allocation3], 1 }

// kernel: multi_head_attention_reciprocal.7
= control target key start
LH: loop header
LB: loop body
LE: loop exit
PB: predicated region body
PF: predicated region fallthrough
CT: control target
= control target key end

     0   :  { %s1479_s0 = inlined_call_operand.vmem [shape: bf16[2,2,8,16], index: 0, kind: input, shape index: {}]   ;;  %s1480_s1 = inlined_call_operand.vmem [shape: bf16[2,2,8,16], index: 1, kind: input, shape index: {}]   ;;  %s1481_s2 = inlined_call_operand.vmem [shape: bf16[2,2,8,16], index: 2, kind: input, shape index: {}]   ;;  %s1482_s3 = inlined_call_operand.vmem [shape: bf16[2,2,8,16], index: 3, kind: input, shape index: {}]   ;;  %s1483_s4 = inlined_call_operand.hbm [shape: f32[2,2,8,8], index: 4, kind: output, shape index: {0}]   ;;  %s1484_s5 = inlined_call_operand.hbm [shape: f32[2,2,8,8], index: 5, kind: output, shape index: {1}]   ;;  %s1485_s6 = inlined_call_operand.vmem [shape: bf16[2,2,8,16], index: 6, kind: output, shape index: {2}]   ;;  %s1486_s7 = inlined_call_operand.vmem [shape: bf16[2,2,8,16], index: 7, kind: output, shape index: {3}]  }
   0x1   :  { %1489 = sst [smem:[#allocation9_spill]] %s1479_s0 }
   0x2   :  { %1490 = sst [smem:[#allocation10_spill]] %s1480_s1 }
   0x3   :  { %1491 = sst [smem:[#allocation11_spill]] %s1481_s2 }
   0x4   :  { %1492 = sst [smem:[#allocation12_spill]] %s1482_s3 }
   0x5   :  { %13 = vsyncpa [#allocation3], 0 }
   0x6   :  { %15 = vsyncpa [#allocation3 + $0x1], 0 }
   0x7   :  { %16 = vsyncpa [#allocation5], 0 }
   0x8   :  { %18 = vsyncpa [#allocation5 + $0x1], 0  ;;  %s1285_s24 = smov 0   ;;  %s1287_s25 = smov 0  }
   0x9   :  { %s1289_s26 = smov 0   ;;  %s1291_s27 = smov 0  }
   0xa   :  { %s1293_s28 = smov 0   ;;  %s1295_s29 = smov 0  }
   0xb   :  { %s1297_s30 = smov 0   ;;  %s1299_s8 = smov 0  }
   0xc LB: > { %s976_s9 = sadd.s32 4294967295, %s1239_s8   ;;  %s977_s10 = sadd.s32 4294967294, %s1239_s8   ;;  %s1239_s8 = sphi %s1299_s8, %s24_s8   ;;  %s1235_s30 = sphi %s1297_s30, %s1508_s30   ;;  %s1231_s29 = sphi %s1295_s29, %s1507_s29   ;;  %s1227_s28 = sphi %s1293_s28, %s1506_s28   ;;  %s1223_s27 = sphi %s1291_s27, %s1505_s27   ;;  %s1219_s26 = sphi %s1289_s26, %s1504_s26   ;;  %s1215_s25 = sphi %s1287_s25, %s1503_s25   ;;  %s1211_s24 = sphi %s1285_s24, %s1502_s24  }
   0xd   : > { %s33_s11 = sadd.s32 1, %s1231_s29  ;;  %s36_s12 = sadd.s32 1, %s1235_s30 }
   0xe   : > { %p34_p0 = scmp.ge.s32.totalorder %s33_s11, 2  ;;  %p167_p1 = scmp.ne.s32.totalorder %s1219_s26, %s1215_s25 }
   0xf   : > { %p168_p2 = scmp.eq.s32.totalorder %s976_s9, 3  ;;  %p173_p5 = scmp.ne.s32.totalorder %s1215_s25, %s1211_s24 }
  0x10   : > { %s1510_s11 = smov (%p34_p0, %s33_s11), 0  ;;  %s1512_s12 = smov (!%p34_p0, %s36_s12), %s1235_s30 }
  0x11   : > { %s153_s13 = ssub.s32 %s1231_s29, %s1510_s11  ;;  %p1336_p3 = por %p168_p2, %p167_p1 }
  0x12   : > { %p38_p4 = scmp.ge.s32.totalorder %s1512_s12, 2  ;;  %p174_p6 = scmp.eq.s32.totalorder %s977_s10, 3 }
  0x13   : > { %p980_p7 = scmp.ge.s32.totalorder %s1239_s8, 1  ;;  %p320_p9 = scmp.lt.s32.totalorder %s1239_s8, 5 }
  0x14   : > { %s1514_s12 = smov (%p38_p4, %s1512_s12), 0  ;;  %p1345_p8 = por %p174_p6, %p173_p5 }
  0x15   : > { %1494 = sst [smem:[#allocation8_spill]] %s1514_s12  ;;  %s152_s16 = ssub.s32 %s1235_s30, %s1514_s12 }
  0x16   : > { %s157_s17 = sadd.s32 1, %s1219_s26  ;;  %s154_s18 = sor.u32 %s153_s13, %s152_s16 }
  0x17   : > { %p321_p10 = pnand %p980_p7, %p320_p9  ;;  %p155_p11 = scmp.eq.s32.totalorder %s154_s18, 0 }
  0x18   : > { %p400_p12 = scmp.lt.s32.totalorder (!%p321_p10), %s1227_s28, 1  ;;  %p402_p13 = scmp.lt.s32.totalorder (!%p321_p10), %s1223_s27, 1 }
  0x19   : > { %s1354_s19 = scalar_select %p155_p11, %s1219_s26, %s157_s17  }
  0x1a   : > { %324 = sbr.rel (%p321_p10) target bundleno = 760 (0x2f8), region = 36  ;;  %s1496_s1 = sld [smem:[#allocation10_spill]] (!%p321_p10) }
  0x1b   : > { %s1497_s0 = sld [smem:[#allocation9_spill]] (!%p321_p10)  ;;  %s1000_s18 = sshll.u32 (!%p321_p10), %s1227_s28, 1 }
  0x1c   : > { %s1498_s2 = sld [smem:[#allocation11_spill]] (!%p321_p10) }
  0x1d   : > { %s1499_s3 = sld [smem:[#allocation12_spill]] (!%p321_p10) }
  0x1f   : > { %v1241_v0 = vmov 0.0   ;;  %vm1242_vm0 = vmmov 0   ;;  %s401_s20 = scalar_select %p400_p12, %s1227_s28, 1  ;;  %vm453_vm1 = vcmask 130048   ;;  %vm500_vm2 = vcmask 64512  }
  0x20   : > { %1012 = vmatprep.subr.bf16.mxu0 %v1241_v0  ;;  %1014 = vmatprep.mubr.msk.bf16.mxu0 %vm1242_vm0, %v1241_v0  ;;  %s403_s21 = scalar_select %p402_p13, %s1223_s27, 1  ;;  %vm568_vm3 = vcmask 1043456  }
  0x21   : > { %1018 = vmatprep.subr.bf16.mxu1 %v1241_v0  ;;  %1020 = vmatprep.mubr.msk.bf16.mxu1 %vm1242_vm0, %v1241_v0  ;;  %s983_s22 = sshll.u32 %s401_s20, 1 }
  0x22   : > { %s405_s23 = sadd.s32 %s983_s22, %s403_s21  ;;  %s1385_s22 = sand.u32 1, %s1215_s25  }
  0x23   : > { %s1366_s9 = sshll.u32 %s405_s23, 2 }
  0x24   : > { %s415_s16 = scalar_lea.vmem %s1496_s1, %s1366_s9  ;;  %s407_s12 = scalar_lea.vmem %s1497_s0, %s1366_s9 }
  0x25   : > { %v450_v1 = vld [vmem:[%s415_s16] sm:$0xf]  ;;  %s423_s21 = scalar_lea.vmem %s1498_s2, %s1366_s9  ;;  %s431_s13 = scalar_lea.vmem %s1499_s3, %s1366_s9 }
  0x26   : > { %v458_v2 = vsel %vm453_vm1, %v450_v1, 0  ;;  %v449_v3 = vld [vmem:[%s407_s12] sm:$0xf]  ;;  %s981_s16 = sshll.u32 %s1385_s22, 3  ;;  %s1399_s12 = sadd.s32 %s1223_s27, %s1000_s18 }
  0x27   : > { %1013 = vmatpush3.bf16.xpose.msra.mxu0 %v458_v2  ;;  %v451_v33 = vld [vmem:[%s423_s21] sm:$0xf]  ;;  %s372_s17 = scalar_lea.vmem [#allocation2], %s981_s16  ;;  %s1488_s20 = sshll.u32 %s1399_s12, 7 }
  0x28   : > { %v570_v34 = vsel %vm568_vm3, %v451_v33, 0  ;;  %v452_v37 = vld [vmem:[%s431_s13] sm:$0xf]  ;;  %s717_s21 = sshll.u32 %s372_s17, 4  ;;  %s1402_s23 = scalar_lea.vmem [#allocation4], %s981_s16  ;;  %s718_s21 = int_to_ptr.vmem [resolvable:$true] %s717_s21 }
  0x29   : > { %1019 = vmatpush3.bf16.msra.mxu1 %v570_v34  ;;  %v633_v39 = vsel %vm568_vm3, %v452_v37, 0  ;;  %s715_s0 = scalar_lea.hbm %s1483_s4, %s1488_s20  ;;  %s681_s1 = scalar_lea.sflag [#allocation3], %s1385_s22 }
  0x2a   : > { %1024 = vmatprep.subr.bf16.mxu1 %v1241_v0  ;;  %s1117_s28 = scalar_lea.vmem %s718_s21, 128  ;;  %s1243_s27 = smov [#allocation2]  }
  0x2b   : > { %p1118_p0 = scmp.ne.s32.totalorder %s718_s21, %s1117_s28  ;;  %s1121_s18 = sshll.u32 %s1243_s27, 4  ;;  %s1122_s18 = int_to_ptr.vmem [resolvable:$false] %s1121_s18 }
  0x2c   : > { %s1123_s16 = scalar_lea.vmem %s1122_s18, 256  ;;  %p1124_p4 = scmp.lt.s32.totalorder %s718_s21, %s1122_s18 }
  0x2d   : > { %p1119_p1 = pnand %p1118_p0, %p1336_p3  ;;  %p1125_p5 = scmp.lt.s32.totalorder %s1123_s16, %s1117_s28 }
  0x2e   : > { %1015 = vmatmul.mubr.msk.bf16.vlgmr.msra.gmra.mxu0 %vm453_vm1, %v449_v3 }
  0x2f   : > { %p1120_p2 = pneg %p1119_p1  ;;  %p1126_p6 = por %p1125_p5, %p1124_p4 }
  0x31   : > { %p1127_p7 = pnand %p1126_p6, %p1120_p2 }
  0xee   : > { %v494_v4 = vpop.f32.mrf.mxu0 }
  0xef   : > { %v501_v5 = vsel %vm500_vm2, %v494_v4, -inf }
  0xf0   : > { %502 = vmax.xlane.f32.xlu0 %v501_v5  ;;  %v512_v6 = vrot.slane %v501_v5, 4  ;;  %v1016_v7 = vpop.f32.mrf.mxu0 }
  0xf2   : > { %v513_v8 = vmax.f32 %v501_v5, %v512_v6  ;;  %v497_v9 = vpop.f32.mrf.mxu0 }
  0xf4   : > { %v514_v10 = vrot.slane %v513_v8, 2  ;;  %v1017_v11 = vpop.f32.mrf.mxu0 }
  0xf6   : > { %v515_v12 = vmax.f32 %v513_v8, %v514_v10 }
  0xf8   : > { %v516_v13 = vrot.slane %v515_v12, 1 }
  0xfa   : > { %v517_v14 = vmax.f32 %v515_v12, %v516_v13 }
  0xfc   : > { %v518_v15 = vsub.f32 %v494_v4, %v517_v14 }
  0xfe   : > { %v519_v16 = vmul.f32 1.442695, %v518_v15 }
 0x100   : > { %1109 = vpow2.f32 %v519_v16 }
 0x10d   : > { %v1110_v17 = vpop.eup %1109 }
 0x10e   : > { %v521_v18 = vsel %vm500_vm2, %v1110_v17, 0.0 }
 0x10f   : > { %v522_v19 = vrot.slane %v521_v18, 4 }
 0x111   : > { %v523_v20 = vadd.f32 %v522_v19, %v521_v18 }
 0x113   : > { %v524_v21 = vrot.slane %v523_v20, 2 }
 0x115   : > { %v525_v22 = vadd.f32 %v524_v21, %v523_v20 }
 0x117   : > { %v526_v23 = vrot.slane %v525_v22, 1 }
 0x119   : > { %v527_v24 = vadd.f32 %v526_v23, %v525_v22 }
 0x11b   : > { %1111 = vrcp.f32 %v527_v24 }
 0x128   : > { %v1112_v25 = vpop.eup %1111 }
 0x129   : > { %v529_v26 = vmul.f32 %v1112_v25, %v1110_v17 }
 0x12b   : > { %v612_v27 = vpack.c.bf16 %v529_v26, %v529_v26 }
 0x12d   : > { %613 = vxpose.xlu1.c.b16.start.end [1/1] (short) (narrow) %v612_v27, 16 }
 0x137   : > { %531 = vxpose.xlu1.b32.start.end [1/1] (short) (narrow) %v529_v26, 8 }
 0x179   : > { %v503_v28 = vpop.xlane.xlu0 %502 }
 0x17a   : > { %v504_v29 = vsub.f32 %v494_v4, %v503_v28 }
 0x17c   : > { %v505_v30 = vmul.f32 1.442695, %v504_v29 }
 0x17e   : > { %1113 = vpow2.f32 %v505_v30 }
 0x18b   : > { %v1114_v31 = vpop.eup %1113 }
 0x18c   : > { %v507_v32 = vsel %vm500_vm2, %v1114_v31, 0.0 }
 0x18d   : > { %508 = vadd.xlane.f32.xlu0 %v507_v32 }
 0x18f   : > { %v621_v41 = vpop.trf.xlu1 }
 0x1b3   : > { %v547_v42 = vpop.trf.xlu1 }
 0x1b4   : > { %563 = vst.msk [vmem:[%s1402_s23] sm:$0xff] %vm500_vm2, %v547_v42 }
 0x216   : > { %v509_v35 = vpop.xlane.xlu0 %508 }
 0x217   : > { %1115 = vrcp.f32 %v509_v35 }
 0x224   : > { %v1116_v36 = vpop.eup %1115 }
 0x225   : > { %v511_v38 = vmul.f32 %v1116_v36, %v1114_v31 }
 0x227   : > { %v564_v40 = vpack.c.bf16 %v511_v38, %v511_v38  ;;  %530 = vst.msk [vmem:[%s372_s17] sm:$0xff] %vm500_vm2, %v511_v38 }
 0x229   : > { %1021 = vmatmul.mubr.msk.bf16.vlgmr.msra.gmra.mxu1 %vm500_vm2, %v564_v40 }
 0x22a   : > { %1025 = vmatpush3.bf16.msra.mxu1 %v633_v39  ;;  %1026 = vmatprep.mubr.msk.bf16.mxu1 %vm1242_vm0, %v1241_v0 }
 0x231   : > { %1027 = vmatmul.mubr.msk.bf16.vlgmr.msra.gmra.mxu1 %vm500_vm2, %v621_v41 }
 0x232   : > { %1130 = shalt.err (!%p1127_p7)
}
 0x233   : > { %s1131_s17 = scalar_lea.hbm %s715_s0, 128  ;;  %s1135_s20 = scalar_lea.hbm %s1483_s4, 512 }
 0x234   : > { %p1132_p9 = scmp.ne.s32.totalorder %s715_s0, %s1131_s17  ;;  %p1136_p12 = scmp.lt.s32.totalorder %s715_s0, %s1483_s4 }
 0x235   : > { %p1137_p13 = scmp.lt.s32.totalorder %s1135_s20, %s1131_s17 }
 0x236   : > { %p1133_p10 = pnand %p1132_p9, %p1336_p3 }
 0x237   : > { %p1138_p0 = por %p1137_p13, %p1136_p12 }
 0x238   : > { %p1134_p11 = pneg %p1133_p10 }
 0x23a   : > { %p1139_p1 = pnand %p1138_p0, %p1134_p11 }
 0x23c   : > { %1142 = shalt.err (!%p1139_p1)
}
 0x23d   : > { %1030 = dma.vmem_to_hbm [thread:$0]  (%p1336_p3), %s718_s21, 128, %s715_s0, %s681_s1  }
 0x23e   : > { %s1500_s28 = sshll.u32 %s1399_s12, 7  ;;  %s732_s10 = sshll.u32 %s1402_s23, 4  ;;  %s733_s10 = int_to_ptr.vmem [resolvable:$true] %s732_s10 }
 0x23f   : > { %s730_s16 = scalar_lea.hbm %s1484_s5, %s1500_s28  ;;  %s686_s2 = scalar_lea.sflag [#allocation5], %s1385_s22 }
 0x240   : > { %s1143_s3 = scalar_lea.vmem %s733_s10, 128  ;;  %s1244_s20 = smov [#allocation4]  }
 0x241   : > { %p1144_p2 = scmp.ne.s32.totalorder %s733_s10, %s1143_s3  ;;  %s1147_s17 = sshll.u32 %s1244_s20, 4  ;;  %s1148_s17 = int_to_ptr.vmem [resolvable:$false] %s1147_s17 }
 0x242   : > { %s1149_s13 = scalar_lea.vmem %s1148_s17, 256  ;;  %p1150_p6 = scmp.lt.s32.totalorder %s733_s10, %s1148_s17 }
 0x243   : > { %p1145_p4 = pnand %p1144_p2, %p1336_p3  ;;  %p1151_p7 = scmp.lt.s32.totalorder %s1149_s13, %s1143_s3 }
 0x245   : > { %p1146_p5 = pneg %p1145_p4  ;;  %p1152_p9 = por %p1151_p7, %p1150_p6 }
 0x247   : > { %p1153_p10 = pnand %p1152_p9, %p1146_p5 }
 0x249   : > { %1156 = shalt.err (!%p1153_p10)
}
 0x24a   : > { %s1157_s0 = scalar_lea.hbm %s730_s16, 128  ;;  %s1161_s12 = scalar_lea.hbm %s1484_s5, 512 }
 0x24b   : > { %p1158_p11 = scmp.ne.s32.totalorder %s730_s16, %s1157_s0  ;;  %p1162_p0 = scmp.lt.s32.totalorder %s730_s16, %s1484_s5 }
 0x24c   : > { %p1163_p1 = scmp.lt.s32.totalorder %s1161_s12, %s1157_s0 }
 0x24d   : > { %p1159_p12 = pnand %p1158_p11, %p1336_p3 }
 0x24e   : > { %p1164_p2 = por %p1163_p1, %p1162_p0 }
 0x24f   : > { %p1160_p13 = pneg %p1159_p12 }
 0x251   : > { %p1165_p4 = pnand %p1164_p2, %p1160_p13 }
 0x253   : > { %1168 = shalt.err (!%p1165_p4)
}
 0x254   : > { %1031 = dma.vmem_to_hbm [thread:$0]  (%p1336_p3), %s733_s10, 128, %s730_s16, %s686_s2   ;;  %vm676_vm4 = vcmask 125952  }
 0x255   : > { %s439_s18 = scalar_lea.vmem %s1485_s6, %s1366_s9  ;;  %s447_s17 = scalar_lea.vmem %s1486_s7, %s1366_s9 }
 0x2e9   : > { %v606_v43 = vpop.f32.mrf.mxu1 }
 0x2ea   : > { %v675_v44 = vpack.c.bf16 %v606_v43, %v606_v43 }
 0x2eb   : > { %v1022_v45 = vpop.f32.mrf.mxu1 }
 0x2ec   : > { %677 = vst.msk [vmem:[%s439_s18] sm:$0xf] %vm676_vm4, %v675_v44 }
 0x2ed   : > { %v609_v46 = vpop.f32.mrf.mxu1 }
 0x2ef   : > { %v1023_v47 = vpop.f32.mrf.mxu1 }
 0x2f1   : > { %v669_v48 = vpop.f32.mrf.mxu1 }
 0x2f2   : > { %v678_v49 = vpack.c.bf16 %v669_v48, %v669_v48 }
 0x2f3   : > { %v1028_v50 = vpop.f32.mrf.mxu1 }
 0x2f4   : > { %679 = vst.msk [vmem:[%s447_s17] sm:$0xf] %vm676_vm4, %v678_v49 }
 0x2f5   : > { %v672_v51 = vpop.f32.mrf.mxu1 }
 0x2f7   : > { %v1029_v52 = vpop.f32.mrf.mxu1 }
 0x2f8 PF: > { %p1041_p3 = scmp.ge.s32.totalorder %s1239_s8, 2  ;;  %s750_s14 = sand.u32 1, %s1211_s24  }
 0x2f9   : > { %s751_s16 = scalar_lea.sflag [#allocation3], %s750_s14 }
 0x2fa   : > { %p1035_p5 = pnand %p1041_p3, %p1345_p8 }
 0x2fc   : > { %p1036_p6 = pneg %p1035_p5 }
 0x2fe   : > { %1202 = dma.done.wait (%p1036_p6), %s751_s16, 128  }
 0x2ff   : > { %1204 = vsyncadd (%p1036_p6), %s751_s16, 4294967168  ;;  %s760_s10 = scalar_lea.sflag [#allocation5], %s750_s14 }
 0x300   : > { %1206 = dma.done.wait (%p1036_p6), %s760_s10, 128  }
 0x301   : > { %1208 = vsyncadd (%p1036_p6), %s760_s10, 4294967168  ;;  %s24_s8 = sadd.s32 1, %s1239_s8   ;;  %s1501_s9 = sld [smem:[#allocation8_spill]] }
 0x302   : > { %p21_p7 = scmp.ge.s32.totalorder %s24_s8, 6   ;;  %s1502_s24 = smov %s1215_s25 }
 0x303   : > { %s1503_s25 = smov %s1219_s26  ;;  %s1504_s26 = smov %s1354_s19 }
 0x304   : > { %s1505_s27 = smov %s1231_s29  ;;  %s1506_s28 = smov %s1235_s30 }
 0x305   : > { %s1507_s29 = smov %s1510_s11  ;;  %23 = sbr.rel (!%p21_p7) target bundleno = 12 (0xc), region = 121 }
 0x307   : > { %s1508_s30 = smov %s1501_s9 }
 0x30a   :  { %787 = vsyncpa [#allocation3], 1 }
 0x30b   :  { %789 = vsyncpa [#allocation3 + $0x1], 1 }
 0x30c   :  { %790 = vsyncpa [#allocation5], 1 }
 0x30d   :  { %792 = vsyncpa [#allocation5 + $0x1], 1 }

</bundles_post_ra>
